<compile_context>
chip_gen: v5e
topology: v5e:2x2
jax: 0.10.0
libtpu: 0.0.40
codegen_flags: <defaults>
</compile_context>

<pallas_src>
import numpy as np
import jax
import jax.numpy as jnp
from jax.experimental import pallas as pl
from jax.experimental.pallas import tpu as pltpu


# ------------------------------------------------------------------------------------
# Kernel A: hoisted input-gate projections, gridded over (direction, gate).
# ------------------------------------------------------------------------------------
def input_proj_kernel(x_ref, w_ref, b_ref, o_ref):
    # per grid point (d, g):  x: (T*B, Dtot)  w: (Dtot, GL)  b: (1, GL)  o: (T, B, GL)
    T, B, GL = o_ref.shape
    y = jnp.dot(x_ref[...], w_ref[...], preferred_element_type=jnp.float32) + b_ref[...]
    o_ref[...] = y.reshape(T, B, GL)


def input_proj(x_cat, w_in, b_in, T, B):
    TB, Dtot = x_cat.shape
    GL = w_in.shape[-1]
    return pl.pallas_call(
        input_proj_kernel,
        out_shape=jax.ShapeDtypeStruct((2, 3, T, B, GL), jnp.float32),
        grid=(2, 3),
        in_specs=[
            pl.BlockSpec((TB, Dtot), lambda d, g: (0, 0)),
            pl.BlockSpec((None, None, Dtot, GL), lambda d, g: (d, g, 0, 0)),
            pl.BlockSpec((None, None, 1, GL), lambda d, g: (d, g, 0, 0)),
        ],
        out_specs=pl.BlockSpec((None, None, T, B, GL), lambda d, g: (d, g, 0, 0, 0)),
        compiler_params=pltpu.CompilerParams(
            dimension_semantics=("parallel", "parallel")),
    )(x_cat, w_in, b_in)


# ------------------------------------------------------------------------------------
# Kernel B: single fused bidirectional GRU over ALL modalities (block-diagonal Whh).
# Only h @ Whh remains on the serial path; masking / per-sequence reversal is in-kernel.
# ------------------------------------------------------------------------------------
def bigru_kernel(gi_ref, whh_ref, bhh_ref, mask_ref, out_ref):
    # gi:   (2, 3, T, B, GL)  [direction, gate(r,z,n), time, batch, modality-packed 3H]
    # whh:  (2, 3, GL, GL)    block-diagonal over modalities
    # bhh:  (2, 3, 1, GL)
    # mask: (T, B, 1)         1.0 where t < length[b] else 0.0
    # out:  (2, T, B, GL)     hidden states; padded positions are exactly zero
    _, _, T, B, GL = gi_ref.shape

    # Hoist weight/bias loads out of the time loop.
    w = [[whh_ref[d, g] for g in range(3)] for d in range(2)]
    bias = [[bhh_ref[d, g] for g in range(3)] for d in range(2)]

    def cell(gi_r, gi_z, gi_n, h, wd, bd):
        gh_r = jnp.dot(h, wd[0], preferred_element_type=jnp.float32) + bd[0]
        gh_z = jnp.dot(h, wd[1], preferred_element_type=jnp.float32) + bd[1]
        gh_n = jnp.dot(h, wd[2], preferred_element_type=jnp.float32) + bd[2]
        r = jax.nn.sigmoid(gi_r + gh_r)
        z = jax.nn.sigmoid(gi_z + gh_z)
        n = jnp.tanh(gi_n + r * gh_n)
        return (1.0 - z) * n + z * h

    def step(t, carry):
        h_f, h_b = carry
        tb = T - 1 - t
        # Forward direction processes time t; backward processes time T-1-t and stays
        # at h=0 until it enters the valid region (== per-sequence reversed packing).
        h_f = mask_ref[t] * cell(gi_ref[0, 0, t], gi_ref[0, 1, t], gi_ref[0, 2, t],
                                 h_f, w[0], bias[0])
        h_b = mask_ref[tb] * cell(gi_ref[1, 0, tb], gi_ref[1, 1, tb], gi_ref[1, 2, tb],
                                  h_b, w[1], bias[1])
        out_ref[0, t] = h_f
        out_ref[1, tb] = h_b
        return (h_f, h_b)

    h0 = jnp.zeros((B, GL), jnp.float32)
    # TODO(synk): at realistic T (>=64) switch to partial unroll (2-4) to bound vregs.
    jax.lax.fori_loop(0, T, step, (h0, h0), unroll=True)


def bigru(gi, w_hh, b_hh, mask):
    _, _, T, B, GL = gi.shape
    return pl.pallas_call(
        bigru_kernel,
        out_shape=jax.ShapeDtypeStruct((2, T, B, GL), jnp.float32),
    )(gi, w_hh, b_hh, mask)


# ------------------------------------------------------------------------------------
# Kernel C: fused FC+ReLU + bi-modal attention (3 pairs) + classifier.
# Classifier accumulates per-block contributions (no 9-way lane concat); O==1 uses the
# VPU (multiply + lane-reduce) instead of an N=1 MXU matmul.
# ------------------------------------------------------------------------------------
def fc_attn_clf_kernel(h_ref, wff_ref, wfb_ref, bfc_ref, cw_ref, cb_ref, o_ref):
    # h: (2, T, B, GL)  wff/wfb: (3, GL, F)  bfc: (3, 1, F)  cw: (9, O, F)  cb: (1, O)
    # o: (B, T, O)
    _, T, B, GL = h_ref.shape
    F = wff_ref.shape[2]
    O = cw_ref.shape[1]
    TB = T * B

    h_f = h_ref[0].reshape(TB, GL)
    h_b = h_ref[1].reshape(TB, GL)

    # Per-modality FC + ReLU via modality-block-structured weights (no lane slicing).
    feats = []
    for m in range(3):
        y = (jnp.dot(h_f, wff_ref[m], preferred_element_type=jnp.float32)
             + jnp.dot(h_b, wfb_ref[m], preferred_element_type=jnp.float32)
             + bfc_ref[m])
        feats.append(jnp.maximum(y, 0.0).reshape(T, B, F))

    def _softmax(x):
        x = x - jnp.max(x, axis=-1, keepdims=True)
        e = jnp.exp(x)
        return e / jnp.sum(e, axis=-1, keepdims=True)

    def bimodal(m1, m2):
        # plain 2-D MXU matmuls (contract the feature axis directly, no transposes)
        s12 = jax.lax.dot_general(m1, m2, (((1,), (1,)), ((), ())),
                                  preferred_element_type=jnp.float32)
        s21 = jax.lax.dot_general(m2, m1, (((1,), (1,)), ((), ())),
                                  preferred_element_type=jnp.float32)
        o1 = jnp.dot(_softmax(s12), m2, preferred_element_type=jnp.float32)
        o2 = jnp.dot(_softmax(s21), m1, preferred_element_type=jnp.float32)
        return o1 * m1, o2 * m2

    # TODO(synk): at production B grid this kernel over the batch axis ("parallel") and
    # size blocks for v7x's 64 MiB VMEM (set vmem_limit_bytes if raised).
    for b in range(B):
        mt = feats[0][:, b, :]
        ma = feats[1][:, b, :]
        mv = feats[2][:, b, :]
        a1_ta, a2_ta = bimodal(mt, ma)
        a1_av, a2_av = bimodal(ma, mv)
        a1_vt, a2_vt = bimodal(mv, mt)
        parts = (a1_ta, a2_ta, a1_av, a2_av, a1_vt, a2_vt, mt, ma, mv)

        acc = jnp.zeros((T, O), jnp.float32) + cb_ref[...]
        if O == 1:
            for i, p in enumerate(parts):
                acc = acc + jnp.sum(p * cw_ref[i], axis=-1, keepdims=True)
        else:
            for i, p in enumerate(parts):
                acc = acc + jax.lax.dot_general(
                    p, cw_ref[i], (((1,), (1,)), ((), ())),
                    preferred_element_type=jnp.float32)
        o_ref[b] = acc


def fc_attn_clf(h_all, wff, wfb, bfc, cw, cb):
    _, T, B, GL = h_all.shape
    O = cw.shape[1]
    return pl.pallas_call(
        fc_attn_clf_kernel,
        out_shape=jax.ShapeDtypeStruct((B, T, O), jnp.float32),
    )(h_all, wff, wfb, bfc, cw, cb)


# ------------------------------------------------------------------------------------
# Full forward pass of Utt_MMMU_BA (3-modality case).
# ------------------------------------------------------------------------------------
def utt_mmmu_ba_forward(sequences, lengths_list, params, modal):
    assert len(modal) == 3  # TODO(synk): 2-modality branch of the module not implemented.
    T, B, _ = sequences[modal[0]].shape

    # Only per-forward glue: feature-axis concat of the raw inputs + the valid mask.
    x_cat = jnp.concatenate([sequences[m].reshape(T * B, -1) for m in modal], axis=-1)
    lengths = jnp.asarray(lengths_list, jnp.int32)
    mask = (jnp.arange(T)[:, None] < lengths[None, :]).astype(jnp.float32)[:, :, None]

    gi = input_proj(x_cat, params["w_in"], params["b_in"], T, B)        # (2,3,T,B,GL)
    h_all = bigru(gi, params["w_hh"], params["b_hh"], mask)             # (2,T,B,GL)
    o = fc_attn_clf(h_all, params["w_fc_f"], params["w_fc_b"], params["b_fc"],
                    params["clf_w"], params["clf_b"])                   # (B,T,O)
    o = o.reshape(B * T, -1)

    # index_select: keep only valid (non-padded) utterance rows (row = b*T + t).
    index = np.concatenate(
        [np.arange(int(lengths_list[i])) + i * T for i in range(len(lengths_list))])
    return jnp.take(o, jnp.asarray(index, dtype=jnp.int32), axis=0)


# ------------------------------------------------------------------------------------
# Parameter construction: generate PyTorch-layout GRU/Linear weights, then pack them
# ONCE into the block-structured layouts the kernels consume (no per-forward packing).
# ------------------------------------------------------------------------------------
def make_params(key, modal, input_dims, hidden_dim, fc_dim, output_dim):
    H = hidden_dim
    n_mod = len(modal)
    GL = n_mod * H
    dims = [input_dims[m] for m in modal]
    Dtot = int(np.sum(dims))
    offs = np.concatenate([[0], np.cumsum(dims)]).astype(np.int64)

    w_in = np.zeros((2, 3, Dtot, GL), np.float32)     # [dir, gate, in-feature, packed H]
    b_in = np.zeros((2, 3, 1, GL), np.float32)
    w_hh = np.zeros((2, 3, GL, GL), np.float32)       # block-diagonal over modalities
    b_hh = np.zeros((2, 3, 1, GL), np.float32)
    w_fc_f = np.zeros((n_mod, GL, fc_dim), np.float32)
    w_fc_b = np.zeros((n_mod, GL, fc_dim), np.float32)
    b_fc = np.zeros((n_mod, 1, fc_dim), np.float32)

    for mi, m in enumerate(modal):
        D = input_dims[m]
        for d in range(2):  # 0 = forward, 1 = backward (reverse) direction weights
            key, k1, k2, k3, k4 = jax.random.split(key, 5)
            wih = 0.1 * jax.random.normal(k1, (3 * H, D), jnp.float32)   # rows: r|z|n
            whh = 0.1 * jax.random.normal(k2, (3 * H, H), jnp.float32)
            bih = 0.1 * jax.random.normal(k3, (3 * H,), jnp.float32)
            bhh = 0.1 * jax.random.normal(k4, (3 * H,), jnp.float32)
            for g in range(3):
                w_in[d, g, offs[mi]:offs[mi + 1], mi * H:(mi + 1) * H] = \
                    np.asarray(wih[g * H:(g + 1) * H]).T
                b_in[d, g, 0, mi * H:(mi + 1) * H] = np.asarray(bih[g * H:(g + 1) * H])
                w_hh[d, g, mi * H:(mi + 1) * H, mi * H:(mi + 1) * H] = \
                    np.asarray(whh[g * H:(g + 1) * H]).T
                b_hh[d, g, 0, mi * H:(mi + 1) * H] = np.asarray(bhh[g * H:(g + 1) * H])
        key, k5, k6 = jax.random.split(key, 3)
        fcw = 0.1 * jax.random.normal(k5, (fc_dim, 2 * H), jnp.float32)  # Linear (out,in)
        fcb = 0.1 * jax.random.normal(k6, (fc_dim,), jnp.float32)
        w_fc_f[mi, mi * H:(mi + 1) * H, :] = np.asarray(fcw[:, :H]).T
        w_fc_b[mi, mi * H:(mi + 1) * H, :] = np.asarray(fcw[:, H:]).T
        b_fc[mi, 0, :] = np.asarray(fcb)

    key, k7, k8 = jax.random.split(key, 3)
    clfw = 0.1 * jax.random.normal(k7, (output_dim, 9 * fc_dim), jnp.float32)
    clfb = 0.1 * jax.random.normal(k8, (output_dim,), jnp.float32)
    clf_w = np.asarray(clfw).reshape(output_dim, 9, fc_dim).transpose(1, 0, 2)  # (9,O,F)
    clf_b = np.asarray(clfb).reshape(1, output_dim)

    return {
        "H": H, "fc_dim": fc_dim, "GL": GL,
        "w_in": jnp.asarray(w_in), "b_in": jnp.asarray(b_in),
        "w_hh": jnp.asarray(w_hh), "b_hh": jnp.asarray(b_hh),
        "w_fc_f": jnp.asarray(w_fc_f), "w_fc_b": jnp.asarray(w_fc_b),
        "b_fc": jnp.asarray(b_fc),
        "clf_w": jnp.asarray(clf_w), "clf_b": jnp.asarray(clf_b),
    }


if __name__ == "__main__":
    modal = ("text", "audio", "video")
    input_dims = {"text": 20, "audio": 12, "video": 16}
    hidden_dim = 16
    fc_dim = 32
    output_dim = 1
    T, B = 8, 2
    lengths = [8, 5]  # sorted descending, as pack_padded_sequence requires

    key = jax.random.PRNGKey(0)
    kp, kt, ka, kv = jax.random.split(key, 4)
    params = make_params(kp, modal, input_dims, hidden_dim, fc_dim, output_dim)

    sequences = {
        "text": jax.random.normal(kt, (T, B, input_dims["text"]), jnp.float32),
        "audio": jax.random.normal(ka, (T, B, input_dims["audio"]), jnp.float32),
        "video": jax.random.normal(kv, (T, B, input_dims["video"]), jnp.float32),
    }

    out = utt_mmmu_ba_forward(sequences, lengths, params, modal)
    out = jax.block_until_ready(out)
    assert out.shape == (sum(lengths), output_dim), out.shape
    assert bool(jnp.all(jnp.isfinite(out)))
    print("KERNEL_OK")
</pallas_src>

<mosaic_0001>
module attributes {stable_mosaic.version = 11 : i64} {
  func.func @input_proj_kernel(%arg0: i32, %arg1: i32, %arg2: memref<16x48xf32, #tpu.memory_space<vmem>>, %arg3: memref<1x1x48x48xf32, #tpu.memory_space<vmem>>, %arg4: memref<1x1x1x48xf32, #tpu.memory_space<vmem>>, %arg5: memref<1x1x8x2x48xf32, #tpu.memory_space<vmem>>) attributes {dimension_semantics = [#tpu.dimension_semantics<parallel>, #tpu.dimension_semantics<parallel>], iteration_bounds = array<i64: 2, 3>, scalar_prefetch = 0 : i64, scratch_operands = 0 : i64, tpu.core_type = #tpu.core_type<tc>, window_params = [{pipeline_mode = #tpu.pipeline_mode<synchronous>, transform_indices = @transform_0, window_bounds = array<i64: 16, 48>}, {transform_indices = @transform_1, window_bounds = array<i64: 1, 1, 48, 48>}, {transform_indices = @transform_2, window_bounds = array<i64: 1, 1, 1, 48>}, {transform_indices = @transform_3, window_bounds = array<i64: 1, 1, 8, 2, 48>}]} {
    %c0 = arith.constant 0 : index
    %c0_0 = arith.constant 0 : index
    %0 = vector.load %arg2[%c0, %c0_0] : memref<16x48xf32, #tpu.memory_space<vmem>>, vector<16x48xf32>
    %c0_1 = arith.constant 0 : index
    %c0_2 = arith.constant 0 : index
    %c0_3 = arith.constant 0 : index
    %c0_4 = arith.constant 0 : index
    %1 = vector.load %arg3[%c0_1, %c0_2, %c0_3, %c0_4] : memref<1x1x48x48xf32, #tpu.memory_space<vmem>>, vector<1x1x48x48xf32>
    %2 = vector.shape_cast %1 : vector<1x1x48x48xf32> to vector<48x48xf32>
    %cst = arith.constant dense<0.000000e+00> : vector<16x48xf32>
    %3 = tpu.matmul %0, %2, %cst {dimension_numbers = #tpu.dot_dimension_numbers<[1], [0], [0], [1], [0, 0, 1, 1], [], []>} : vector<16x48xf32>, vector<48x48xf32>, vector<16x48xf32> -> vector<16x48xf32>
    %c0_5 = arith.constant 0 : index
    %c0_6 = arith.constant 0 : index
    %c0_7 = arith.constant 0 : index
    %c0_8 = arith.constant 0 : index
    %4 = vector.load %arg4[%c0_5, %c0_6, %c0_7, %c0_8] : memref<1x1x1x48xf32, #tpu.memory_space<vmem>>, vector<1x1x1x48xf32>
    %5 = vector.shape_cast %4 : vector<1x1x1x48xf32> to vector<1x48xf32>
    %6 = vector.broadcast %5 : vector<1x48xf32> to vector<16x48xf32>
    %7 = arith.addf %3, %6 : vector<16x48xf32>
    %8 = vector.shape_cast %7 : vector<16x48xf32> to vector<8x2x48xf32>
    %c0_9 = arith.constant 0 : index
    %c0_10 = arith.constant 0 : index
    %c0_11 = arith.constant 0 : index
    %c0_12 = arith.constant 0 : index
    %c0_13 = arith.constant 0 : index
    %9 = vector.load %arg5[%c0_9, %c0_10, %c0_11, %c0_12, %c0_13] : memref<1x1x8x2x48xf32, #tpu.memory_space<vmem>>, vector<1x1x8x2x48xf32>
    %10 = vector.shape_cast %9 : vector<1x1x8x2x48xf32> to vector<8x2x48xf32>
    %11 = vector.shape_cast %8 : vector<8x2x48xf32> to vector<1x1x8x2x48xf32>
    tpu.vector_store %arg5[%c0_9, %c0_10, %c0_11, %c0_12, %c0_13], %11 {strides = array<i32>} : memref<1x1x8x2x48xf32, #tpu.memory_space<vmem>>, vector<1x1x8x2x48xf32>,
    return
  }
  func.func @transform_0(%arg0: i32, %arg1: i32) -> (i32, i32) {
    %c0_i32 = arith.constant 0 : i32
    %c0_i32_0 = arith.constant 0 : i32
    %c0_i32_1 = arith.constant 0 : i32
    return %c0_i32, %c0_i32_0 : i32, i32
  }
  func.func @transform_1(%arg0: i32, %arg1: i32) -> (i32, i32, i32, i32) {
    %c0_i32 = arith.constant 0 : i32
    %c0_i32_0 = arith.constant 0 : i32
    %c0_i32_1 = arith.constant 0 : i32
    return %arg0, %arg1, %c0_i32, %c0_i32_0 : i32, i32, i32, i32
  }
  func.func @transform_2(%arg0: i32, %arg1: i32) -> (i32, i32, i32, i32) {
    %c0_i32 = arith.constant 0 : i32
    %c0_i32_0 = arith.constant 0 : i32
    %c0_i32_1 = arith.constant 0 : i32
    return %arg0, %arg1, %c0_i32, %c0_i32_0 : i32, i32, i32, i32
  }
  func.func @transform_3(%arg0: i32, %arg1: i32) -> (i32, i32, i32, i32, i32) {
    %c0_i32 = arith.constant 0 : i32
    %c0_i32_0 = arith.constant 0 : i32
    %c0_i32_1 = arith.constant 0 : i32
    %c0_i32_2 = arith.constant 0 : i32
    return %arg0, %arg1, %c0_i32, %c0_i32_0, %c0_i32_1 : i32, i32, i32, i32, i32
  }
}

</mosaic_0001>

<bundles_post_ra>
// kernel: tpu_custom_call.1
= control target key start
LH: loop header
LB: loop body
LE: loop exit
PB: predicated region body
PF: predicated region fallthrough
CT: control target
= control target key end

     0   :  { %s1014_s0 = inlined_call_operand.hbm [shape: f32[16,48], index: 0, kind: input, shape index: {}]   ;;  %s1015_s1 = inlined_call_operand.hbm [shape: f32[2,3,48,48], index: 1, kind: input, shape index: {}]   ;;  %s1016_s2 = inlined_call_operand.hbm [shape: f32[2,3,1,48], index: 2, kind: input, shape index: {}]   ;;  %s1017_s3 = inlined_call_operand.hbm [shape: f32[2,3,8,2,48], index: 3, kind: output, shape index: {}]  }
   0x1   :  { %1023 = sst [smem:[#allocation14_spill]] %s1014_s0 }
   0x2   :  { %1024 = sst [smem:[#allocation15_spill]] %s1015_s1 }
   0x3   :  { %8 = vsyncpa [#allocation3], 0 }
   0x4   :  { %9 = vsyncpa [#allocation6], 0 }
   0x5   :  { %11 = vsyncpa [#allocation6 + $0x1], 0 }
   0x6   :  { %12 = vsyncpa [#allocation4], 0 }
   0x7   :  { %14 = vsyncpa [#allocation4 + $0x1], 0  ;;  %s811_s12 = smov 0   ;;  %s813_s13 = smov 0  }
   0x8   :  { %s815_s14 = smov 0   ;;  %s817_s15 = smov 0  }
   0x9   :  { %s819_s16 = smov 0   ;;  %s821_s17 = smov 0  }
   0xa   :  { %s823_s18 = smov 0   ;;  %s825_s19 = smov 0  }
   0xb LB: > { %s29_s20 = sadd.s32 1, %s776_s17  ;;  %s32_s21 = sadd.s32 1, %s780_s18  ;;  %s784_s19 = sphi %s825_s19, %s20_s19   ;;  %s780_s18 = sphi %s823_s18, %s1045_s18   ;;  %s776_s17 = sphi %s821_s17, %s1044_s17   ;;  %s772_s16 = sphi %s819_s16, %s1043_s16   ;;  %s768_s15 = sphi %s817_s15, %s1042_s15   ;;  %s764_s14 = sphi %s815_s14, %s1041_s14   ;;  %s760_s13 = sphi %s813_s13, %s1040_s13   ;;  %s756_s12 = sphi %s811_s12, %s1039_s12  }
   0xc   : > { %p30_p0 = scmp.ge.s32.totalorder %s29_s20, 3  ;;  %s62_s22 = sadd.s32 1, %s764_s14 }
   0xd   : > { %p69_p1 = scmp.ne.s32.totalorder %s764_s14, %s760_s13  ;;  %p70_p2 = scmp.eq.s32.totalorder %s784_s19, 0 }
   0xe   : > { %s1047_s20 = smov (%p30_p0, %s29_s20), 0  ;;  %s1049_s21 = smov (!%p30_p0, %s32_s21), %s780_s18 }
   0xf   : > { %1025 = sst [smem:[#allocation12_spill]] %s1047_s20  ;;  %s58_s23 = ssub.s32 %s776_s17, %s1047_s20 }
  0x10   : > { %p71_p3 = por %p70_p2, %p69_p1  ;;  %p34_p4 = scmp.ge.s32.totalorder %s1049_s21, 2 }
  0x11   : > { %p519_p5 = scmp.lt.s32.totalorder %s784_s19, 6  ;;  %s169_s24 = sand.u32 1, %s784_s19  }
  0x12   : > { %s1051_s21 = smov (%p34_p4, %s1049_s21), 0  ;;  %s1018_s27 = sand.u32 1, %s764_s14  }
  0x13   : > { %1026 = sst [smem:[#allocation13_spill]] %s1051_s21  ;;  %s57_s25 = ssub.s32 %s780_s18, %s1051_s21 }
  0x14   : > { %s59_s26 = sor.u32 %s58_s23, %s57_s25  ;;  %s487_s28 = smul.u32 48, %s1018_s27 }
  0x15   : > { %p60_p6 = scmp.eq.s32.totalorder %s59_s26, 0  ;;  %s488_s29 = smul.u32 6, %s776_s17 }
  0x16   : > { %p875_p7 = pnand %p519_p5, %p71_p3  ;;  %s489_s5 = smul.u32 18, %s780_s18 }
  0x17   : > { %s880_s4 = scalar_select %p60_p6, %s764_s14, %s62_s22  }
  0x18   : > { %s173_s6 = scalar_lea.vmem [#allocation5], %s487_s28  ;;  %s178_s8 = sadd.s32 %s489_s5, %s488_s29 }
  0x19   : > { %s183_s7 = sshll.u32 %s173_s6, 4  ;;  %s470_s9 = sshll.u32 %s178_s8, 3  ;;  %s184_s7 = int_to_ptr.vmem [resolvable:$true] %s183_s7 }
  0x1a   : > { %s1028_s1 = sld [smem:[#allocation15_spill]]  ;;  %s886_s22 = scalar_lea.sflag [#allocation6], %s169_s24 }
  0x1b   : > { %s1019_s26 = smov 128   ;;  %s1020_s27 = smov 8  }
  0x1c   : > { %s895_s28 = sadd.s32 4294967295, %s784_s19   ;;  %s466_s29 = sadd.s32 4294967294, %s784_s19  }
  0x1d   : > { %p75_p8 = scmp.ne.s32.totalorder %s760_s13, %s756_s12  ;;  %p76_p9 = scmp.eq.s32.totalorder %s895_s28, 0 }
  0x1e   : > { %p129_p10 = scmp.eq.s32.totalorder %s895_s28, 5  ;;  %p135_p11 = scmp.eq.s32.totalorder %s466_s29, 5 }
  0x1f   : > { %p904_p12 = por %p76_p9, %p75_p8  ;;  %p467_p13 = scmp.ge.s32.totalorder %s784_s19, 1 }
  0x20   : > { %s180_s23 = scalar_lea.hbm %s1028_s1, %s470_s9  ;;  %p912_p0 = por %p129_p10, %p69_p1 }
  0x21   : > { %s181_s25 = sshll.u32 %s180_s23, 4  ;;  %p916_p2 = por %p135_p11, %p75_p8  ;;  %s182_s25 = int_to_ptr.hbm [resolvable:$true] %s181_s25 }
  0x22   : > { %510 = dma.hbm_to_vmem [thread:$0]  (!%p875_p7), %s182_s25, 768, %s184_s7, %s886_s22, %s1019_s26, %s1019_s26, %s1020_s27  }
  0x23   : > { %p142_p3 = scmp.lt.s32.totalorder %s784_s19, 7  ;;  %s1032_s0 = sld [smem:[#allocation14_spill]] }
  0x24   : > { %s788_s11 = smov [#allocation2]   ;;  %s490_s25 = smul.u32 3, %s780_s18 }
  0x25   : > { %p924_p4 = pnand %p467_p13, %p142_p3  ;;  %s155_s23 = sshll.u32 %s788_s11, 4  ;;  %s156_s23 = int_to_ptr.vmem [resolvable:$true] %s155_s23 }
  0x26   : > { %s1034_s29 = sand.u32 1, %s764_s14   ;;  %s200_s7 = sadd.s32 %s776_s17, %s490_s25 }
  0x27   : > { %p503_p1 = pneg %p924_p4  ;;  %s196_s26 = scalar_lea.vmem [#allocation7], %s1034_s29 }
  0x28   : > { %s205_s27 = sshll.u32 %s196_s26, 4  ;;  %s201_s1 = scalar_lea.hbm %s1016_s2, %s200_s7  ;;  %s206_s27 = int_to_ptr.vmem [resolvable:$true] %s205_s27 }
  0x29   : > { %s153_s9 = sshll.u32 %s1032_s0, 4  ;;  %p504_p5 = pnand %p503_p1, %p76_p9  ;;  %s154_s9 = int_to_ptr.hbm [resolvable:$true] %s153_s9 }
  0x2a   : > { %s1035_s21 = smov 8   ;;  %s1036_s20 = smov 128  }
  0x2b   : > { %506 = dma.hbm_to_vmem [thread:$0]  (!%p504_p5), %s154_s9, 256, %s156_s23, [#allocation3], %s1036_s20, %s1036_s20, %s1035_s21  }
  0x2c   : > { %s203_s11 = sshll.u32 %s201_s1, 4  ;;  %214 = sbr.rel (%p924_p4) target bundleno = 206 (0xce), region = 32  ;;  %s204_s11 = int_to_ptr.hbm [resolvable:$true] %s203_s11 }
  0x2d   : > { %513 = dma.hbm_to_vmem [thread:$0]  (!%p875_p7), %s204_s11, 16, %s206_s27, %s886_s22  }
  0x31   : > { %743 = dma.done.wait (%p76_p9), [#allocation3], 256  }
  0x32   : > { %745 = vsyncadd (%p76_p9), [#allocation3], 4294967040  ;;  %s221_s0 = sand.u32 1, %s895_s28   ;;  %s953_s26 = sand.u32 1, %s760_s13  }
  0x33   : > { %s491_s1 = smul.u32 48, %s953_s26  ;;  %s222_s20 = scalar_lea.sflag [#allocation6], %s221_s0 }
  0x35   : > { %s225_s21 = scalar_lea.vmem [#allocation5], %s491_s1 }
  0x36   : > { %747 = dma.done.wait (%p904_p12), %s222_s20, 784  }
  0x37   : > { %749 = vsyncadd (%p904_p12), %s222_s20, 4294966512  ;;  %v269_v0 = vld [vmem:[%s225_s21 + $0x28] sm:$0xff]  ;;  %v268_v1 = vld [vmem:[%s225_s21 + $0x20] sm:$0xff]  ;;  %s234_s27 = scalar_lea.vmem [#allocation7], %s953_s26  ;;  %vm274_vm0 = vcmask 392192   ;;  %s492_s30 = smul.u32 24, %s772_s16 }
  0x38   : > { %291 = vmatpush.msra.mxu0 %v269_v0  ;;  %481 = vmatpush.msra.mxu1 %v269_v0  ;;  %v267_v2 = vld [vmem:[%s225_s21 + $0x18] sm:$0xff]  ;;  %v266_v3 = vld [vmem:[%s225_s21 + $0x10] sm:$0xff]  ;;  %v265_v4 = vld [vmem:[%s225_s21 + $0x8] sm:$0xff]  ;;  %s477_s22 = sshll.u32 %s768_s15, 3  ;;  %s473_s24 = sshll.u32 %s953_s26, 4  ;;  %vm318_vm1 = vcmask 386048  }
  0x39   : > { %v264_v5 = vld [vmem:[%s225_s21] sm:$0xff]  ;;  %v263_v7 = vld [vmem:[#allocation2 + $0x8] sm:$0xff]  ;;  %s339_s28 = sadd.s32 %s492_s30, %s477_s22  ;;  %s261_s29 = scalar_lea.vmem [#allocation8], %s473_s24 }
  0x3a   : > { %292 = vmatpush.msra.mxu0 %v268_v1  ;;  %482 = vmatpush.msra.mxu1 %v268_v1  ;;  %v262_v6 = vld [vmem:[#allocation2] sm:$0xff]  ;;  %s478_s9 = sshll.u32 %s339_s28, 1  ;;  %s342_s15 = sshll.u32 %s261_s29, 4  ;;  %s343_s15 = int_to_ptr.vmem [resolvable:$true] %s342_s15 }
  0x3b   : > { %v591_v8 = vld [vmem:[%s234_s27] ss:$0 sm:$0xff]  ;;  %s341_s25 = scalar_lea.hbm %s1017_s3, %s478_s9  ;;  %s328_s7 = scalar_lea.sflag [#allocation4], %s953_s26 }
  0x3c   : > { %293 = vmatpush.msra.mxu0 %v267_v2  ;;  %483 = vmatpush.msra.mxu1 %v267_v2  ;;  %s344_s16 = sshll.u32 %s341_s25, 4  ;;  %s702_s20 = scalar_lea.hbm %s1017_s3, 96  ;;  %s345_s16 = int_to_ptr.hbm [resolvable:$true] %s344_s16 }
  0x3d   : > { %s696_s8 = sshra.s32 %s345_s16, 4  ;;  %s697_s8 = int_to_ptr.hbm [resolvable:$true] %s696_s8 }
  0x3e   : > { %294 = vmatpush.msra.mxu0 %v266_v3  ;;  %484 = vmatpush.msra.mxu1 %v266_v3  ;;  %s698_s11 = scalar_lea.hbm %s697_s8, 16  ;;  %p703_p9 = scmp.lt.s32.totalorder %s697_s8, %s1017_s3 }
  0x3f   : > { %p699_p6 = scmp.ne.s32.totalorder %s697_s8, %s698_s11  ;;  %p704_p10 = scmp.lt.s32.totalorder %s702_s20, %s698_s11 }
  0x40   : > { %295 = vmatpush.msra.mxu0 %v265_v4  ;;  %485 = vmatpush.msra.mxu1 %v265_v4 }
  0x41   : > { %p700_p7 = pnand %p699_p6, %p912_p0  ;;  %p705_p11 = por %p704_p10, %p703_p9 }
  0x42   : > { %296 = vmatpush.msra.mxu0 %v264_v5  ;;  %486 = vmatpush.msra.mxu1 %v264_v5 }
  0x43   : > { %474 = vmatmul.msk.f32.vlgmr.msra.gmra.mxu0 %vm274_vm0, %v262_v6  ;;  %475 = vmatmul.msk.f32.vlgmr.msra.gmra.mxu1 %vm274_vm0, %v263_v7  ;;  %p701_p8 = pneg %p700_p7 }
  0x45   : > { %p706_p12 = pnand %p705_p11, %p701_p8 }
  0xc0   : > { %v298_v9 = vpop.f32.mrf.mxu0  ;;  %v301_v10 = vpop.f32.mrf.mxu1 }
  0xc1   : > { %v299_v11 = vadd.f32 %v591_v8, %v298_v9  ;;  %v302_v12 = vadd.f32 %v591_v8, %v301_v10 }
  0xc3   : > { %v306_v13 = vrot.slane %v299_v11, 2  ;;  %v307_v14 = vrot.slane %v299_v11, 4  ;;  %v308_v15 = vrot.slane %v299_v11, 6  ;;  %319 = vst.msk [vmem:[%s261_s29] sm:$0x3] %vm318_vm1, %v299_v11  ;;  %v309_v16 = vrot.slane %v302_v12, 2 }
  0xc4   : > { %323 = vst.msk [vmem:[%s261_s29 + $0x8] sm:$0x3] %vm318_vm1, %v302_v12  ;;  %v310_v17 = vrot.slane %v302_v12, 4  ;;  %v311_v18 = vrot.slane %v302_v12, 6 }
  0xc5   : > { %320 = vst.msk [vmem:[%s261_s29 + $0x2] sm:$0x3] %vm318_vm1, %v306_v13 }
  0xc6   : > { %321 = vst.msk [vmem:[%s261_s29 + $0x4] sm:$0x3] %vm318_vm1, %v307_v14 }
  0xc7   : > { %322 = vst.msk [vmem:[%s261_s29 + $0x6] sm:$0x3] %vm318_vm1, %v308_v15 }
  0xc8   : > { %324 = vst.msk [vmem:[%s261_s29 + $0xa] sm:$0x3] %vm318_vm1, %v309_v16 }
  0xc9   : > { %325 = vst.msk [vmem:[%s261_s29 + $0xc] sm:$0x3] %vm318_vm1, %v310_v17 }
  0xca   : > { %326 = vst.msk [vmem:[%s261_s29 + $0xe] sm:$0x3] %vm318_vm1, %v311_v18 }
  0xcb   : > { %709 = shalt.err (!%p706_p12)
}
  0xcc   : > { %s789_s26 = smov 32   ;;  %s790_s30 = smov 2  }
  0xcd   : > { %501 = dma.vmem_to_hbm [thread:$0]  (%p912_p0), %s343_s15, 256, %s345_s16, %s328_s7, %s789_s26, %s789_s26, %s790_s30  }
  0xce PF: > { %p521_p13 = scmp.ge.s32.totalorder %s784_s19, 2  ;;  %s359_s22 = sand.u32 1, %s756_s12  }
  0xcf   : > { %s360_s28 = scalar_lea.sflag [#allocation4], %s359_s22 }
  0xd0   : > { %p515_p3 = pnand %p521_p13, %p916_p2 }
  0xd2   : > { %p516_p4 = pneg %p515_p3 }
  0xd4   : > { %751 = dma.done.wait (%p516_p4), %s360_s28, 256  }
  0xd5   : > { %753 = vsyncadd (%p516_p4), %s360_s28, 4294967040  ;;  %s20_s19 = sadd.s32 1, %s784_s19   ;;  %s1037_s5 = sld [smem:[#allocation12_spill]] }
  0xd6   : > { %p17_p1 = scmp.ge.s32.totalorder %s20_s19, 8   ;;  %s1038_s24 = sld [smem:[#allocation13_spill]] }
  0xd7   : > { %s1039_s12 = smov %s760_s13  ;;  %s1040_s13 = smov %s764_s14 }
  0xd8   : > { %s1041_s14 = smov %s880_s4  ;;  %s1042_s15 = smov %s776_s17 }
  0xd9   : > { %s1043_s16 = smov %s780_s18  ;;  %19 = sbr.rel (!%p17_p1) target bundleno = 11 (0xb), region = 93 }
  0xdb   : > { %s1044_s17 = smov %s1037_s5 }
  0xdc   : > { %s1045_s18 = smov %s1038_s24 }
  0xde   :  { %366 = vsyncpa [#allocation3], 1 }
  0xdf   :  { %368 = vsyncpa [#allocation3 + $0x1], 1 }
  0xe0   :  { %369 = vsyncpa [#allocation6], 1 }
  0xe1   :  { %371 = vsyncpa [#allocation6 + $0x1], 1 }
  0xe2   :  { %372 = vsyncpa [#allocation4], 1 }
  0xe3   :  { %374 = vsyncpa [#allocation4 + $0x1], 1 }

</bundles_post_ra>
